<compile_context>
chip_gen: v6e
topology: v6e:2x2x1
jax: 0.10.0
libtpu: 0.0.40
codegen_flags: <defaults>
</compile_context>

<pallas_src>
import functools

import jax
import jax.numpy as jnp
from jax.experimental import pallas as pl
from jax.experimental.pallas import tpu as pltpu

LANE = 128


def _round_up(x, m):
    return (x + m - 1) // m * m


def _pad2d(a, rows, cols):
    r, c = a.shape
    return jnp.pad(a, ((0, rows - r), (0, cols - c)))


def _choose_tiles(n_pad):
    """Tile sizes for the (N, N) Laplacian (n_pad is a multiple of 128).

    Kept modest so (double-buffered L tile + resident XW slab + f32 acc) fits
    comfortably inside the default 32 MiB scoped VMEM on every generation
    (v5e/v6e: 128 MiB physical, v7x: 64 MiB physical)."""
    tm = 256 if n_pad % 256 == 0 else 128
    tk = 512 if n_pad % 512 == 0 else (256 if n_pad % 256 == 0 else 128)
    return min(tm, n_pad), min(tk, n_pad)


# ---------------------------------------------------------------------------
# Pallas kernel 1: theta  (XW = X @ W + b), lane-padded, bias folded in once.
# ---------------------------------------------------------------------------
def _theta_kernel(x_ref, w_ref, b_ref, o_ref):
    xw = jnp.dot(x_ref[...], w_ref[...], preferred_element_type=jnp.float32)
    o_ref[...] = (xw + b_ref[...]).astype(o_ref.dtype)


def theta(x_pad, w_pad, b_pad, *, tm, out_dtype):
    n_pad, c_in = x_pad.shape
    c_out = w_pad.shape[1]
    return pl.pallas_call(
        _theta_kernel,
        out_shape=jax.ShapeDtypeStruct((n_pad, c_out), out_dtype),
        grid=(n_pad // tm,),
        in_specs=[
            pl.BlockSpec((tm, c_in), lambda i: (i, 0)),     # X row slab
            pl.BlockSpec((c_in, c_out), lambda i: (0, 0)),  # W resident
            pl.BlockSpec((1, c_out), lambda i: (0, 0)),     # b resident
        ],
        out_specs=pl.BlockSpec((tm, c_out), lambda i: (i, 0)),
        compiler_params=pltpu.CompilerParams(
            dimension_semantics=("parallel",)),
    )(x_pad, w_pad, b_pad)


# ---------------------------------------------------------------------------
# Pallas kernel 2: hypergraph smoothing  Y = [relu]( L @ XW )
#   L streamed in bf16 tiles, XW slab resident, f32 accumulator scratch.
# ---------------------------------------------------------------------------
def _smooth_kernel(l_ref, xw_ref, o_ref, acc_ref, *, tk, apply_relu):
    k = pl.program_id(1)

    @pl.when(k == 0)
    def _():
        acc_ref[...] = jnp.zeros_like(acc_ref)

    start = pl.multiple_of(k * tk, tk)
    xw_tile = xw_ref[pl.ds(start, tk), :]
    acc_ref[...] += jnp.dot(l_ref[...], xw_tile,
                            preferred_element_type=jnp.float32)

    @pl.when(k == pl.num_programs(1) - 1)
    def _():
        y = acc_ref[...]
        if apply_relu:
            y = jnp.maximum(y, 0.0)
        o_ref[...] = y.astype(o_ref.dtype)


def smoothing(l_pad, xw_pad, *, tm, tk, apply_relu, out_dtype):
    n_pad = l_pad.shape[0]
    c_out = xw_pad.shape[1]
    kernel = functools.partial(_smooth_kernel, tk=tk, apply_relu=apply_relu)
    return pl.pallas_call(
        kernel,
        out_shape=jax.ShapeDtypeStruct((n_pad, c_out), out_dtype),
        grid=(n_pad // tm, n_pad // tk),
        in_specs=[
            pl.BlockSpec((tm, tk), lambda i, k: (i, k)),        # L streamed
            pl.BlockSpec((n_pad, c_out), lambda i, k: (0, 0)),  # XW resident
        ],
        out_specs=pl.BlockSpec((tm, c_out), lambda i, k: (i, 0)),
        scratch_shapes=[pltpu.VMEM((tm, c_out), jnp.float32)],
        compiler_params=pltpu.CompilerParams(
            dimension_semantics=("parallel", "arbitrary")),
    )(l_pad, xw_pad)


# ---------------------------------------------------------------------------
# Glue (plain JAX): dense HGNN Laplacian from a padded hyperedge list.
#   L = D_v^{-1/2} H W_e D_e^{-1} H^T D_v^{-1/2},   W_e = I
# TODO(synk): dense O(N^2) L; a block-sparse / scalar-prefetch formulation
#             would exploit the ~2E+N nonzeros for large hypergraphs.
# ---------------------------------------------------------------------------
def build_hgnn_laplacian(he_idx, he_mask, num_v, dtype=jnp.float32):
    E = he_idx.shape[0]
    edge_ids = jnp.broadcast_to(jnp.arange(E)[:, None], he_idx.shape)
    H = jnp.zeros((num_v, E), dtype)
    H = H.at[he_idx, edge_ids].max(he_mask.astype(dtype))   # binary incidence
    w_e = jnp.ones((E,), dtype)
    d_e = H.sum(axis=0)                                      # edge degrees
    d_v = (H * w_e[None, :]).sum(axis=1)                     # vertex degrees
    d_e_inv = jnp.where(d_e > 0, 1.0 / jnp.where(d_e > 0, d_e, 1.0), 0.0)
    d_v_isqrt = jnp.where(
        d_v > 0, jax.lax.rsqrt(jnp.where(d_v > 0, d_v, 1.0)), 0.0)
    Hn = d_v_isqrt[:, None] * H                              # D_v^{-1/2} H
    return (Hn * (w_e * d_e_inv)[None, :]) @ Hn.T


# ---------------------------------------------------------------------------
# Full HGNN forward (eval mode).
# ---------------------------------------------------------------------------
def hgnn_forward(X, he_idx, he_mask, params):
    N, c_in = X.shape
    c_hid = params["W1"].shape[1]
    c_cls = params["W2"].shape[1]

    L = build_hgnn_laplacian(he_idx, he_mask, N, dtype=jnp.float32)

    # Pad to TPU-friendly shapes: rows to a tileable multiple of 128,
    # channels to 128 lanes (lane-dense stores, full-width MXU feeds).
    n_pad = _round_up(N, LANE)
    cin_p = _round_up(c_in, LANE)
    chid_p = _round_up(c_hid, LANE)
    ccls_p = _round_up(c_cls, LANE)
    tm, tk = _choose_tiles(n_pad)

    # L streamed in bf16 (halves HBM traffic; f32 accumulation in-kernel).
    L_pad = _pad2d(L, n_pad, n_pad).astype(jnp.bfloat16)
    X_pad = _pad2d(X, n_pad, cin_p)
    W1_pad = _pad2d(params["W1"], cin_p, chid_p)
    b1_pad = _pad2d(params["b1"], 1, chid_p)
    W2_pad = _pad2d(params["W2"], chid_p, ccls_p)
    b2_pad = _pad2d(params["b2"], 1, ccls_p)

    # Layer 1: theta -> smoothing -> ReLU.  Dropout(p=0.5) is eval identity.
    # TODO(synk): training-mode dropout (RNG masking) not implemented.
    xw1 = theta(X_pad, W1_pad, b1_pad, tm=tm, out_dtype=jnp.bfloat16)
    y1 = smoothing(L_pad, xw1, tm=tm, tk=tk, apply_relu=True,
                   out_dtype=jnp.float32)

    # Layer 2 (is_last=True): theta -> smoothing.
    xw2 = theta(y1, W2_pad, b2_pad, tm=tm, out_dtype=jnp.bfloat16)
    y2 = smoothing(L_pad, xw2, tm=tm, tk=tk, apply_relu=False,
                   out_dtype=jnp.float32)

    return y2[:N, :c_cls]


def init_params(key, c_in, c_hid, c_cls, dtype=jnp.float32):
    """nn.Linear-style init: U(-1/sqrt(fan_in), 1/sqrt(fan_in)); W stored as
    (fan_in, fan_out) (torch weight transposed)."""
    k1, k2, k3, k4 = jax.random.split(key, 4)
    lim1 = 1.0 / jnp.sqrt(c_in)
    lim2 = 1.0 / jnp.sqrt(c_hid)
    return {
        "W1": jax.random.uniform(k1, (c_in, c_hid), dtype, -lim1, lim1),
        "b1": jax.random.uniform(k2, (1, c_hid), dtype, -lim1, lim1),
        "W2": jax.random.uniform(k3, (c_hid, c_cls), dtype, -lim2, lim2),
        "b2": jax.random.uniform(k4, (1, c_cls), dtype, -lim2, lim2),
    }


if __name__ == "__main__":
    N, C_IN, C_HID, C_CLS = 16, 8, 32, 4

    root = jax.random.PRNGKey(0)
    k_x, k_params = jax.random.split(root, 2)

    # Input vertex features (N, C_in)
    X = jax.random.normal(k_x, (N, C_IN), dtype=jnp.float32)

    # Synthetic hypergraph: 6 hyperedges over N=16 vertices, padded to size 4.
    he_idx = jnp.array(
        [
            [0, 1, 2, 3],
            [4, 5, 6, 0],
            [7, 8, 9, 0],
            [10, 11, 0, 0],
            [12, 13, 14, 0],
            [15, 0, 1, 0],
        ],
        dtype=jnp.int32,
    )
    he_mask = jnp.array(
        [
            [True, True, True, True],
            [True, True, True, False],
            [True, True, True, False],
            [True, True, False, False],
            [True, True, True, False],
            [True, True, True, False],
        ]
    )

    params = init_params(k_params, C_IN, C_HID, C_CLS)

    fwd = jax.jit(hgnn_forward)
    out = fwd(X, he_idx, he_mask, params)
    out = jax.block_until_ready(out)

    assert out.shape == (N, C_CLS), out.shape
    assert out.dtype == jnp.float32
    assert bool(jnp.all(jnp.isfinite(out)))
    print("KERNEL_OK")
</pallas_src>

<mosaic_0001>
module attributes {stable_mosaic.version = 11 : i64} {
  func.func private @main(%arg0: i32) attributes {dimension_semantics = [#tpu.dimension_semantics<core_parallel>], iteration_bounds = array<i64: 2>, tpu.core_type = #tpu.core_type<sc_scalar_subcore>, window_params = []} {
    return
  }
}

module attributes {stable_mosaic.version = 11 : i64} {
  func.func private @main(%arg0: i32) attributes {dimension_semantics = [#tpu.dimension_semantics<core_parallel>], iteration_bounds = array<i64: 2>, tpu.core_type = #tpu.core_type<sc_scalar_subcore>, window_params = []} {
    return
  }
}

module attributes {stable_mosaic.version = 11 : i64} {
  func.func @_smooth_kernel(%arg0: i32, %arg1: i32, %arg2: memref<128x128xbf16, #tpu.memory_space<vmem>>, %arg3: memref<128x128xbf16, #tpu.memory_space<vmem>>, %arg4: memref<128x128xf32, #tpu.memory_space<vmem>>, %arg5: memref<128x128xf32, #tpu.memory_space<vmem>>) attributes {dimension_semantics = [#tpu.dimension_semantics<parallel>, #tpu.dimension_semantics<arbitrary>], iteration_bounds = array<i64: 1, 1>, scalar_prefetch = 0 : i64, scratch_operands = 1 : i64, tpu.core_type = #tpu.core_type<tc>, window_params = [{transform_indices = @transform_0, window_bounds = array<i64: 128, 128>}, {pipeline_mode = #tpu.pipeline_mode<synchronous>, transform_indices = @transform_1, window_bounds = array<i64: 128, 128>}, {transform_indices = @transform_2, window_bounds = array<i64: 128, 128>}]} {
    %c0_i32 = arith.constant 0 : i32
    %0 = arith.cmpi eq, %arg1, %c0_i32 : i32
    %1 = arith.extui %0 : i1 to i32
    %c0_i32_0 = arith.constant 0 : i32
    %2 = arith.cmpi ne, %1, %c0_i32_0 : i32
    scf.if %2 {
      %cst_9 = arith.constant 0.000000e+00 : f32
      %15 = vector.broadcast %cst_9 : f32 to vector<128x128xf32>
      %c0_10 = arith.constant 0 : index
      %c0_11 = arith.constant 0 : index
      %16 = vector.load %arg5[%c0_10, %c0_11] : memref<128x128xf32, #tpu.memory_space<vmem>>, vector<128x128xf32>
      tpu.vector_store %arg5[%c0_10, %c0_11], %15 {strides = array<i32>} : memref<128x128xf32, #tpu.memory_space<vmem>>, vector<128x128xf32>,
    } else {
    }
    %c128_i32 = arith.constant 128 : i32
    %3 = arith.muli %arg1, %c128_i32 : i32
    %4 = tpu.assume_multiple %3, 128 : i32
    %5 = arith.index_cast %4 : i32 to index
    %c0 = arith.constant 0 : index
    %6 = vector.load %arg3[%5, %c0] : memref<128x128xbf16, #tpu.memory_space<vmem>>, vector<128x128xbf16>
    %c0_1 = arith.constant 0 : index
    %c0_2 = arith.constant 0 : index
    %7 = vector.load %arg5[%c0_1, %c0_2] : memref<128x128xf32, #tpu.memory_space<vmem>>, vector<128x128xf32>
    %c0_3 = arith.constant 0 : index
    %c0_4 = arith.constant 0 : index
    %8 = vector.load %arg2[%c0_3, %c0_4] : memref<128x128xbf16, #tpu.memory_space<vmem>>, vector<128x128xbf16>
    %cst = arith.constant dense<0.000000e+00> : vector<128x128xf32>
    %9 = tpu.matmul %8, %6, %cst {dimension_numbers = #tpu.dot_dimension_numbers<[1], [0], [0], [1], [0, 0, 1, 1], [], []>} : vector<128x128xbf16>, vector<128x128xbf16>, vector<128x128xf32> -> vector<128x128xf32>
    %10 = arith.addf %7, %9 : vector<128x128xf32>
    %c0_5 = arith.constant 0 : index
    %c0_6 = arith.constant 0 : index
    %11 = vector.load %arg5[%c0_5, %c0_6] : memref<128x128xf32, #tpu.memory_space<vmem>>, vector<128x128xf32>
    tpu.vector_store %arg5[%c0_5, %c0_6], %10 {strides = array<i32>} : memref<128x128xf32, #tpu.memory_space<vmem>>, vector<128x128xf32>,
    %c0_i32_7 = arith.constant 0 : i32
    %12 = arith.cmpi eq, %arg1, %c0_i32_7 : i32
    %13 = arith.extui %12 : i1 to i32
    %c0_i32_8 = arith.constant 0 : i32
    %14 = arith.cmpi ne, %13, %c0_i32_8 : i32
    scf.if %14 {
      %c0_9 = arith.constant 0 : index
      %c0_10 = arith.constant 0 : index
      %15 = vector.load %arg5[%c0_9, %c0_10] : memref<128x128xf32, #tpu.memory_space<vmem>>, vector<128x128xf32>
      %c0_11 = arith.constant 0 : index
      %c0_12 = arith.constant 0 : index
      %16 = vector.load %arg4[%c0_11, %c0_12] : memref<128x128xf32, #tpu.memory_space<vmem>>, vector<128x128xf32>
      tpu.vector_store %arg4[%c0_11, %c0_12], %15 {strides = array<i32>} : memref<128x128xf32, #tpu.memory_space<vmem>>, vector<128x128xf32>,
    } else {
    }
    return
  }
  func.func @transform_0(%arg0: i32, %arg1: i32) -> (i32, i32) {
    %c0_i32 = arith.constant 0 : i32
    return %arg0, %arg1 : i32, i32
  }
  func.func @transform_1(%arg0: i32, %arg1: i32) -> (i32, i32) {
    %c0_i32 = arith.constant 0 : i32
    %c0_i32_0 = arith.constant 0 : i32
    %c0_i32_1 = arith.constant 0 : i32
    return %c0_i32, %c0_i32_0 : i32, i32
  }
  func.func @transform_2(%arg0: i32, %arg1: i32) -> (i32, i32) {
    %c0_i32 = arith.constant 0 : i32
    %c0_i32_0 = arith.constant 0 : i32
    return %arg0, %c0_i32 : i32, i32
  }
}

module attributes {stable_mosaic.version = 11 : i64} {
  func.func @_theta_kernel(%arg0: i32, %arg1: memref<128x128xf32, #tpu.memory_space<vmem>>, %arg2: memref<128x128xf32, #tpu.memory_space<vmem>>, %arg3: memref<1x128xf32, #tpu.memory_space<vmem>>, %arg4: memref<128x128xbf16, #tpu.memory_space<vmem>>) attributes {dimension_semantics = [#tpu.dimension_semantics<parallel>], iteration_bounds = array<i64: 1>, scalar_prefetch = 0 : i64, scratch_operands = 0 : i64, tpu.core_type = #tpu.core_type<tc>, window_params = [{transform_indices = @transform_0, window_bounds = array<i64: 128, 128>}, {pipeline_mode = #tpu.pipeline_mode<synchronous>, transform_indices = @transform_1, window_bounds = array<i64: 128, 128>}, {pipeline_mode = #tpu.pipeline_mode<synchronous>, transform_indices = @transform_2, window_bounds = array<i64: 1, 128>}, {transform_indices = @transform_3, window_bounds = array<i64: 128, 128>}]} {
    %c0 = arith.constant 0 : index
    %c0_0 = arith.constant 0 : index
    %0 = vector.load %arg1[%c0, %c0_0] : memref<128x128xf32, #tpu.memory_space<vmem>>, vector<128x128xf32>
    %c0_1 = arith.constant 0 : index
    %c0_2 = arith.constant 0 : index
    %1 = vector.load %arg2[%c0_1, %c0_2] : memref<128x128xf32, #tpu.memory_space<vmem>>, vector<128x128xf32>
    %cst = arith.constant dense<0.000000e+00> : vector<128x128xf32>
    %2 = tpu.matmul %0, %1, %cst {dimension_numbers = #tpu.dot_dimension_numbers<[1], [0], [0], [1], [0, 0, 1, 1], [], []>} : vector<128x128xf32>, vector<128x128xf32>, vector<128x128xf32> -> vector<128x128xf32>
    %c0_3 = arith.constant 0 : index
    %c0_4 = arith.constant 0 : index
    %3 = vector.load %arg3[%c0_3, %c0_4] : memref<1x128xf32, #tpu.memory_space<vmem>>, vector<1x128xf32>
    %4 = vector.broadcast %3 : vector<1x128xf32> to vector<128x128xf32>
    %5 = arith.addf %2, %4 : vector<128x128xf32>
    %6 = arith.truncf %5 : vector<128x128xf32> to vector<128x128xbf16>
    %c0_5 = arith.constant 0 : index
    %c0_6 = arith.constant 0 : index
    %7 = vector.load %arg4[%c0_5, %c0_6] : memref<128x128xbf16, #tpu.memory_space<vmem>>, vector<128x128xbf16>
    tpu.vector_store %arg4[%c0_5, %c0_6], %6 {strides = array<i32>} : memref<128x128xbf16, #tpu.memory_space<vmem>>, vector<128x128xbf16>,
    return
  }
  func.func @transform_0(%arg0: i32) -> (i32, i32) {
    %c0_i32 = arith.constant 0 : i32
    %c0_i32_0 = arith.constant 0 : i32
    return %arg0, %c0_i32 : i32, i32
  }
  func.func @transform_1(%arg0: i32) -> (i32, i32) {
    %c0_i32 = arith.constant 0 : i32
    %c0_i32_0 = arith.constant 0 : i32
    %c0_i32_1 = arith.constant 0 : i32
    return %c0_i32, %c0_i32_0 : i32, i32
  }
  func.func @transform_2(%arg0: i32) -> (i32, i32) {
    %c0_i32 = arith.constant 0 : i32
    %c0_i32_0 = arith.constant 0 : i32
    %c0_i32_1 = arith.constant 0 : i32
    return %c0_i32, %c0_i32_0 : i32, i32
  }
  func.func @transform_3(%arg0: i32) -> (i32, i32) {
    %c0_i32 = arith.constant 0 : i32
    %c0_i32_0 = arith.constant 0 : i32
    return %arg0, %c0_i32 : i32, i32
  }
}

module attributes {stable_mosaic.version = 11 : i64} {
  func.func @_smooth_kernel(%arg0: i32, %arg1: i32, %arg2: memref<128x128xbf16, #tpu.memory_space<vmem>>, %arg3: memref<128x128xbf16, #tpu.memory_space<vmem>>, %arg4: memref<128x128xf32, #tpu.memory_space<vmem>>, %arg5: memref<128x128xf32, #tpu.memory_space<vmem>>) attributes {dimension_semantics = [#tpu.dimension_semantics<parallel>, #tpu.dimension_semantics<arbitrary>], iteration_bounds = array<i64: 1, 1>, scalar_prefetch = 0 : i64, scratch_operands = 1 : i64, tpu.core_type = #tpu.core_type<tc>, window_params = [{transform_indices = @transform_0, window_bounds = array<i64: 128, 128>}, {pipeline_mode = #tpu.pipeline_mode<synchronous>, transform_indices = @transform_1, window_bounds = array<i64: 128, 128>}, {transform_indices = @transform_2, window_bounds = array<i64: 128, 128>}]} {
    %c0_i32 = arith.constant 0 : i32
    %0 = arith.cmpi eq, %arg1, %c0_i32 : i32
    %1 = arith.extui %0 : i1 to i32
    %c0_i32_0 = arith.constant 0 : i32
    %2 = arith.cmpi ne, %1, %c0_i32_0 : i32
    scf.if %2 {
      %cst_9 = arith.constant 0.000000e+00 : f32
      %15 = vector.broadcast %cst_9 : f32 to vector<128x128xf32>
      %c0_10 = arith.constant 0 : index
      %c0_11 = arith.constant 0 : index
      %16 = vector.load %arg5[%c0_10, %c0_11] : memref<128x128xf32, #tpu.memory_space<vmem>>, vector<128x128xf32>
      tpu.vector_store %arg5[%c0_10, %c0_11], %15 {strides = array<i32>} : memref<128x128xf32, #tpu.memory_space<vmem>>, vector<128x128xf32>,
    } else {
    }
    %c128_i32 = arith.constant 128 : i32
    %3 = arith.muli %arg1, %c128_i32 : i32
    %4 = tpu.assume_multiple %3, 128 : i32
    %5 = arith.index_cast %4 : i32 to index
    %c0 = arith.constant 0 : index
    %6 = vector.load %arg3[%5, %c0] : memref<128x128xbf16, #tpu.memory_space<vmem>>, vector<128x128xbf16>
    %c0_1 = arith.constant 0 : index
    %c0_2 = arith.constant 0 : index
    %7 = vector.load %arg5[%c0_1, %c0_2] : memref<128x128xf32, #tpu.memory_space<vmem>>, vector<128x128xf32>
    %c0_3 = arith.constant 0 : index
    %c0_4 = arith.constant 0 : index
    %8 = vector.load %arg2[%c0_3, %c0_4] : memref<128x128xbf16, #tpu.memory_space<vmem>>, vector<128x128xbf16>
    %cst = arith.constant dense<0.000000e+00> : vector<128x128xf32>
    %9 = tpu.matmul %8, %6, %cst {dimension_numbers = #tpu.dot_dimension_numbers<[1], [0], [0], [1], [0, 0, 1, 1], [], []>} : vector<128x128xbf16>, vector<128x128xbf16>, vector<128x128xf32> -> vector<128x128xf32>
    %10 = arith.addf %7, %9 : vector<128x128xf32>
    %c0_5 = arith.constant 0 : index
    %c0_6 = arith.constant 0 : index
    %11 = vector.load %arg5[%c0_5, %c0_6] : memref<128x128xf32, #tpu.memory_space<vmem>>, vector<128x128xf32>
    tpu.vector_store %arg5[%c0_5, %c0_6], %10 {strides = array<i32>} : memref<128x128xf32, #tpu.memory_space<vmem>>, vector<128x128xf32>,
    %c0_i32_7 = arith.constant 0 : i32
    %12 = arith.cmpi eq, %arg1, %c0_i32_7 : i32
    %13 = arith.extui %12 : i1 to i32
    %c0_i32_8 = arith.constant 0 : i32
    %14 = arith.cmpi ne, %13, %c0_i32_8 : i32
    scf.if %14 {
      %c0_9 = arith.constant 0 : index
      %c0_10 = arith.constant 0 : index
      %15 = vector.load %arg5[%c0_9, %c0_10] : memref<128x128xf32, #tpu.memory_space<vmem>>, vector<128x128xf32>
      %cst_11 = arith.constant 0.000000e+00 : f32
      %16 = vector.broadcast %cst_11 : f32 to vector<128x128xf32>
      %17 = arith.maximumf %15, %16 : vector<128x128xf32>
      %c0_12 = arith.constant 0 : index
      %c0_13 = arith.constant 0 : index
      %18 = vector.load %arg4[%c0_12, %c0_13] : memref<128x128xf32, #tpu.memory_space<vmem>>, vector<128x128xf32>
      tpu.vector_store %arg4[%c0_12, %c0_13], %17 {strides = array<i32>} : memref<128x128xf32, #tpu.memory_space<vmem>>, vector<128x128xf32>,
    } else {
    }
    return
  }
  func.func @transform_0(%arg0: i32, %arg1: i32) -> (i32, i32) {
    %c0_i32 = arith.constant 0 : i32
    return %arg0, %arg1 : i32, i32
  }
  func.func @transform_1(%arg0: i32, %arg1: i32) -> (i32, i32) {
    %c0_i32 = arith.constant 0 : i32
    %c0_i32_0 = arith.constant 0 : i32
    %c0_i32_1 = arith.constant 0 : i32
    return %c0_i32, %c0_i32_0 : i32, i32
  }
  func.func @transform_2(%arg0: i32, %arg1: i32) -> (i32, i32) {
    %c0_i32 = arith.constant 0 : i32
    %c0_i32_0 = arith.constant 0 : i32
    return %arg0, %c0_i32 : i32, i32
  }
}

</mosaic_0001>

<bundles_post_ra>
// kernel: hgnn_forward.7
= control target key start
LH: loop header
LB: loop body
LE: loop exit
PB: predicated region body
PF: predicated region fallthrough
CT: control target
= control target key end

     0   :  { %s558_s1 = inlined_call_operand.vmem [shape: bf16[128,128], index: 1, kind: input, shape index: {}]   ;;  %s559_s0 = inlined_call_operand.vmem [shape: bf16[128,128], index: 0, kind: input, shape index: {}]   ;;  %s560_s2 = inlined_call_operand.vmem [shape: f32[128,128], index: 2, kind: output, shape index: {}]  }
   0x1   :  { %v431_v0 = vld [vmem:[%s558_s1 + $0x38] sm:$0xff]   ;;  %v432_v1 = vld [vmem:[%s558_s1 + $0x30] sm:$0xff]   ;;  %v433_v2 = vld [vmem:[%s558_s1 + $0x28] sm:$0xff]  }
   0x2   :  { %383 = vmatprep.subr.bf16.mxu0 %v431_v0  ;;  %415 = vmatprep.subr.bf16.mxu1 %v431_v0  ;;  %v434_v3 = vld [vmem:[%s558_s1 + $0x20] sm:$0xff]   ;;  %v435_v6 = vld [vmem:[%s558_s1 + $0x18] sm:$0xff]   ;;  %v436_v7 = vld [vmem:[%s558_s1 + $0x10] sm:$0xff]  }
   0x3   :  { %384 = vmatpush3.bf16.msra.mxu0 %v431_v0  ;;  %423 = vmatpush3.bf16.msra.mxu1 %v431_v0  ;;  %v439_v4 = vld [vmem:[%s559_s0] sm:$0xff]   ;;  %v437_v8 = vld [vmem:[%s558_s1 + $0x8] sm:$0xff]   ;;  %v443_v12 = vld [vmem:[%s559_s0 + $0x10] sm:$0xff]  }
   0x4   :  { %385 = vmatprep.subr.bf16.mxu0 %v432_v1  ;;  %416 = vmatprep.subr.bf16.mxu1 %v432_v1  ;;  %v440_v5 = vld [vmem:[%s559_s0 + $0x20] sm:$0xff]   ;;  %v441_v10 = vld [vmem:[%s559_s0 + $0x8] sm:$0xff]   ;;  %v444_v13 = vld [vmem:[%s559_s0 + $0x30] sm:$0xff]  }
   0x5   :  { %399 = vmatprep.mubr.bf16.mxu0 %v439_v4  ;;  %407 = vmatprep.mubr.bf16.mxu1 %v440_v5  ;;  %v438_v9 = vld [vmem:[%s558_s1] sm:$0xff]   ;;  %v442_v11 = vld [vmem:[%s559_s0 + $0x28] sm:$0xff]   ;;  %v445_v14 = vld [vmem:[%s559_s0 + $0x18] sm:$0xff]  }
   0x6   :  { %v446_v15 = vld [vmem:[%s559_s0 + $0x38] sm:$0xff]  }
   0x7   :  { %386 = vmatpush3.bf16.msra.mxu0 %v432_v1  ;;  %424 = vmatpush3.bf16.msra.mxu1 %v432_v1 }
   0x8   :  { %387 = vmatprep.subr.bf16.mxu0 %v433_v2  ;;  %417 = vmatprep.subr.bf16.mxu1 %v433_v2 }
   0xb   :  { %388 = vmatpush3.bf16.msra.mxu0 %v433_v2  ;;  %425 = vmatpush3.bf16.msra.mxu1 %v433_v2 }
   0xc   :  { %389 = vmatprep.subr.bf16.mxu0 %v434_v3  ;;  %418 = vmatprep.subr.bf16.mxu1 %v434_v3 }
   0xf   :  { %390 = vmatpush3.bf16.msra.mxu0 %v434_v3  ;;  %426 = vmatpush3.bf16.msra.mxu1 %v434_v3 }
  0x10   :  { %391 = vmatprep.subr.bf16.mxu0 %v435_v6  ;;  %419 = vmatprep.subr.bf16.mxu1 %v435_v6 }
  0x13   :  { %392 = vmatpush3.bf16.msra.mxu0 %v435_v6  ;;  %427 = vmatpush3.bf16.msra.mxu1 %v435_v6 }
  0x14   :  { %393 = vmatprep.subr.bf16.mxu0 %v436_v7  ;;  %420 = vmatprep.subr.bf16.mxu1 %v436_v7 }
  0x17   :  { %394 = vmatpush3.bf16.msra.mxu0 %v436_v7  ;;  %428 = vmatpush3.bf16.msra.mxu1 %v436_v7 }
  0x18   :  { %395 = vmatprep.subr.bf16.mxu0 %v437_v8  ;;  %421 = vmatprep.subr.bf16.mxu1 %v437_v8 }
  0x1b   :  { %396 = vmatpush3.bf16.msra.mxu0 %v437_v8  ;;  %429 = vmatpush3.bf16.msra.mxu1 %v437_v8 }
  0x1c   :  { %397 = vmatprep.subr.bf16.mxu0 %v438_v9  ;;  %422 = vmatprep.subr.bf16.mxu1 %v438_v9 }
  0x1f   :  { %398 = vmatpush3.bf16.msra.mxu0 %v438_v9  ;;  %430 = vmatpush3.bf16.msra.mxu1 %v438_v9 }
  0x22   :  { %400 = vmatmul.mubr.bf16.vlgmr.msra.gmra.mxu0 %v441_v10  ;;  %408 = vmatmul.mubr.bf16.vlgmr.msra.gmra.mxu1 %v442_v11 }
  0x23   :  { %403 = vmatprep.mubr.bf16.mxu0 %v443_v12  ;;  %411 = vmatprep.mubr.bf16.mxu1 %v444_v13 }
  0x2a   :  { %404 = vmatmul.mubr.bf16.gmra.mxu0 %v445_v14  ;;  %412 = vmatmul.mubr.bf16.gmra.mxu1 %v446_v15 }
  0xe2   :  { %v401_v16 = vpop.f32.mrf.mxu0  ;;  %v409_v17 = vpop.f32.mrf.mxu1 }
  0xe3   :  { %331 = vst [vmem:[%s560_s2 + $0x10] sm:$0xff] %v401_v16  ;;  %339 = vst [vmem:[%s560_s2 + $0x50] sm:$0xff] %v409_v17 }
  0xe4   :  { %v215_v18 = vpop.f32.mrf.mxu0  ;;  %v247_v19 = vpop.f32.mrf.mxu1 }
  0xe5   :  { %329 = vst [vmem:[%s560_s2] sm:$0xff] %v215_v18  ;;  %337 = vst [vmem:[%s560_s2 + $0x40] sm:$0xff] %v247_v19 }
  0xe6   :  { %v402_v20 = vpop.f32.mrf.mxu0  ;;  %v410_v21 = vpop.f32.mrf.mxu1 }
  0xe7   :  { %332 = vst [vmem:[%s560_s2 + $0x18] sm:$0xff] %v402_v20  ;;  %340 = vst [vmem:[%s560_s2 + $0x58] sm:$0xff] %v410_v21 }
  0xe8   :  { %v218_v22 = vpop.f32.mrf.mxu0  ;;  %v250_v23 = vpop.f32.mrf.mxu1 }
  0xe9   :  { %330 = vst [vmem:[%s560_s2 + $0x8] sm:$0xff] %v218_v22  ;;  %338 = vst [vmem:[%s560_s2 + $0x48] sm:$0xff] %v250_v23 }
  0xea   :  { %v405_v24 = vpop.f32.mrf.mxu0  ;;  %v413_v25 = vpop.f32.mrf.mxu1 }
  0xeb   :  { %335 = vst [vmem:[%s560_s2 + $0x30] sm:$0xff] %v405_v24  ;;  %343 = vst [vmem:[%s560_s2 + $0x70] sm:$0xff] %v413_v25 }
  0xec   :  { %v231_v26 = vpop.f32.mrf.mxu0  ;;  %v263_v27 = vpop.f32.mrf.mxu1 }
  0xed   :  { %333 = vst [vmem:[%s560_s2 + $0x20] sm:$0xff] %v231_v26  ;;  %341 = vst [vmem:[%s560_s2 + $0x60] sm:$0xff] %v263_v27 }
  0xee   :  { %v406_v28 = vpop.f32.mrf.mxu0  ;;  %v414_v29 = vpop.f32.mrf.mxu1 }
  0xef   :  { %336 = vst [vmem:[%s560_s2 + $0x38] sm:$0xff] %v406_v28  ;;  %344 = vst [vmem:[%s560_s2 + $0x78] sm:$0xff] %v414_v29 }
  0xf0   :  { %v234_v30 = vpop.f32.mrf.mxu0  ;;  %v266_v31 = vpop.f32.mrf.mxu1 }
  0xf1   :  { %334 = vst [vmem:[%s560_s2 + $0x28] sm:$0xff] %v234_v30  ;;  %342 = vst [vmem:[%s560_s2 + $0x68] sm:$0xff] %v266_v31 }

// kernel: hgnn_forward.4
= control target key start
LH: loop header
LB: loop body
LE: loop exit
PB: predicated region body
PF: predicated region fallthrough
CT: control target
= control target key end

     0   :  { %s625_s1 = inlined_call_operand.vmem [shape: f32[128,128], index: 1, kind: input, shape index: {}]   ;;  %s626_s0 = inlined_call_operand.vmem [shape: f32[128,128], index: 0, kind: input, shape index: {}]   ;;  %s627_s2 = inlined_call_operand.vmem [shape: f32[1,128], index: 2, kind: input, shape index: {}]   ;;  %s628_s3 = inlined_call_operand.vmem [shape: bf16[128,128], index: 3, kind: output, shape index: {}]  }
   0x1   :  { %v45_v0 = vld [vmem:[%s625_s1 + $0x78] sm:$0xff]  ;;  %v44_v1 = vld [vmem:[%s625_s1 + $0x70] sm:$0xff]  ;;  %v43_v2 = vld [vmem:[%s625_s1 + $0x68] sm:$0xff] }
   0x2   :  { %394 = vmatprep.subr.mxu0 %v45_v0  ;;  %450 = vmatprep.subr.mxu1 %v45_v0  ;;  %v42_v3 = vld [vmem:[%s625_s1 + $0x60] sm:$0xff]  ;;  %v41_v4 = vld [vmem:[%s625_s1 + $0x58] sm:$0xff]  ;;  %v40_v5 = vld [vmem:[%s625_s1 + $0x50] sm:$0xff] }
   0x3   :  { %395 = vmatpush3.msra.mxu0 %v45_v0  ;;  %466 = vmatpush3.msra.mxu1 %v45_v0  ;;  %v39_v6 = vld [vmem:[%s625_s1 + $0x48] sm:$0xff]  ;;  %v38_v7 = vld [vmem:[%s625_s1 + $0x40] sm:$0xff]  ;;  %v37_v8 = vld [vmem:[%s625_s1 + $0x38] sm:$0xff] }
   0x4   :  { %396 = vmatprep.subr.mxu0 %v44_v1  ;;  %451 = vmatprep.subr.mxu1 %v44_v1  ;;  %v36_v9 = vld [vmem:[%s625_s1 + $0x30] sm:$0xff]  ;;  %v35_v10 = vld [vmem:[%s625_s1 + $0x28] sm:$0xff]  ;;  %v34_v11 = vld [vmem:[%s625_s1 + $0x20] sm:$0xff] }
   0x5   :  { %397 = vmatpush3.msra.mxu0 %v44_v1  ;;  %467 = vmatpush3.msra.mxu1 %v44_v1  ;;  %v33_v12 = vld [vmem:[%s625_s1 + $0x18] sm:$0xff]  ;;  %v32_v13 = vld [vmem:[%s625_s1 + $0x10] sm:$0xff]  ;;  %v31_v14 = vld [vmem:[%s625_s1 + $0x8] sm:$0xff] }
   0x6   :  { %398 = vmatprep.subr.mxu0 %v43_v2  ;;  %452 = vmatprep.subr.mxu1 %v43_v2  ;;  %v30_v15 = vld [vmem:[%s625_s1] sm:$0xff]  ;;  %v15_v18 = vld [vmem:[%s626_s0 + $0x8] sm:$0xff]  ;;  %v16_v20 = vld [vmem:[%s626_s0 + $0x10] sm:$0xff] }
   0x7   :  { %399 = vmatpush3.msra.mxu0 %v43_v2  ;;  %468 = vmatpush3.msra.mxu1 %v43_v2  ;;  %v14_v16 = vld [vmem:[%s626_s0] sm:$0xff]  ;;  %v23_v19 = vld [vmem:[%s626_s0 + $0x48] sm:$0xff]  ;;  %v24_v21 = vld [vmem:[%s626_s0 + $0x50] sm:$0xff] }
   0x8   :  { %400 = vmatprep.subr.mxu0 %v42_v3  ;;  %453 = vmatprep.subr.mxu1 %v42_v3  ;;  %v22_v17 = vld [vmem:[%s626_s0 + $0x40] sm:$0xff]  ;;  %v17_v22 = vld [vmem:[%s626_s0 + $0x18] sm:$0xff]  ;;  %v19_v26 = vld [vmem:[%s626_s0 + $0x28] sm:$0xff] }
   0x9   :  { %401 = vmatpush3.msra.mxu0 %v42_v3  ;;  %469 = vmatpush3.msra.mxu1 %v42_v3  ;;  %v25_v23 = vld [vmem:[%s626_s0 + $0x58] sm:$0xff]  ;;  %v18_v24 = vld [vmem:[%s626_s0 + $0x20] sm:$0xff]  ;;  %v27_v27 = vld [vmem:[%s626_s0 + $0x68] sm:$0xff] }
   0xa   :  { %402 = vmatprep.subr.mxu0 %v41_v4  ;;  %454 = vmatprep.subr.mxu1 %v41_v4  ;;  %v26_v25 = vld [vmem:[%s626_s0 + $0x60] sm:$0xff]  ;;  %v20_v28 = vld [vmem:[%s626_s0 + $0x30] sm:$0xff]  ;;  %v21_v30 = vld [vmem:[%s626_s0 + $0x38] sm:$0xff] }
   0xb   :  { %403 = vmatpush3.msra.mxu0 %v41_v4  ;;  %470 = vmatpush3.msra.mxu1 %v41_v4  ;;  %v28_v29 = vld [vmem:[%s626_s0 + $0x70] sm:$0xff]  ;;  %v29_v31 = vld [vmem:[%s626_s0 + $0x78] sm:$0xff]  ;;  %v282_v33 = vld [vmem:[%s627_s2] ss:$0 sm:$0xff] }
   0xc   :  { %404 = vmatprep.subr.mxu0 %v40_v5  ;;  %455 = vmatprep.subr.mxu1 %v40_v5 }
   0xd   :  { %405 = vmatpush3.msra.mxu0 %v40_v5  ;;  %471 = vmatpush3.msra.mxu1 %v40_v5 }
   0xe   :  { %406 = vmatprep.subr.mxu0 %v39_v6  ;;  %456 = vmatprep.subr.mxu1 %v39_v6 }
   0xf   :  { %407 = vmatpush3.msra.mxu0 %v39_v6  ;;  %472 = vmatpush3.msra.mxu1 %v39_v6 }
  0x10   :  { %408 = vmatprep.subr.mxu0 %v38_v7  ;;  %457 = vmatprep.subr.mxu1 %v38_v7 }
  0x11   :  { %409 = vmatpush3.msra.mxu0 %v38_v7  ;;  %473 = vmatpush3.msra.mxu1 %v38_v7 }
  0x12   :  { %410 = vmatprep.subr.mxu0 %v37_v8  ;;  %458 = vmatprep.subr.mxu1 %v37_v8 }
  0x13   :  { %411 = vmatpush3.msra.mxu0 %v37_v8  ;;  %474 = vmatpush3.msra.mxu1 %v37_v8 }
  0x14   :  { %412 = vmatprep.subr.mxu0 %v36_v9  ;;  %459 = vmatprep.subr.mxu1 %v36_v9 }
  0x15   :  { %413 = vmatpush3.msra.mxu0 %v36_v9  ;;  %475 = vmatpush3.msra.mxu1 %v36_v9 }
  0x16   :  { %414 = vmatprep.subr.mxu0 %v35_v10  ;;  %460 = vmatprep.subr.mxu1 %v35_v10 }
  0x17   :  { %415 = vmatpush3.msra.mxu0 %v35_v10  ;;  %476 = vmatpush3.msra.mxu1 %v35_v10 }
  0x18   :  { %416 = vmatprep.subr.mxu0 %v34_v11  ;;  %461 = vmatprep.subr.mxu1 %v34_v11 }
  0x19   :  { %417 = vmatpush3.msra.mxu0 %v34_v11  ;;  %477 = vmatpush3.msra.mxu1 %v34_v11 }
  0x1a   :  { %418 = vmatprep.subr.mxu0 %v33_v12  ;;  %462 = vmatprep.subr.mxu1 %v33_v12 }
  0x1b   :  { %419 = vmatpush3.msra.mxu0 %v33_v12  ;;  %478 = vmatpush3.msra.mxu1 %v33_v12 }
  0x1c   :  { %420 = vmatprep.subr.mxu0 %v32_v13  ;;  %463 = vmatprep.subr.mxu1 %v32_v13 }
  0x1d   :  { %421 = vmatpush3.msra.mxu0 %v32_v13  ;;  %479 = vmatpush3.msra.mxu1 %v32_v13 }
  0x1e   :  { %422 = vmatprep.subr.mxu0 %v31_v14  ;;  %464 = vmatprep.subr.mxu1 %v31_v14 }
  0x1f   :  { %423 = vmatpush3.msra.mxu0 %v31_v14  ;;  %480 = vmatpush3.msra.mxu1 %v31_v14 }
  0x20   :  { %424 = vmatprep.subr.mxu0 %v30_v15  ;;  %465 = vmatprep.subr.mxu1 %v30_v15 }
  0x21   :  { %425 = vmatpush3.msra.mxu0 %v30_v15  ;;  %481 = vmatpush3.msra.mxu1 %v30_v15 }
  0x22   :  { %426 = vmatprep.mubr.f32.mxu0 %v14_v16  ;;  %438 = vmatprep.mubr.f32.mxu1 %v22_v17 }
  0x23   :  { %427 = vmatmul.mubr.f32.vlgmr.msra.gmra.mxu0 %v15_v18  ;;  %439 = vmatmul.mubr.f32.vlgmr.msra.gmra.mxu1 %v23_v19 }
  0x24   :  { %429 = vmatprep.mubr.f32.mxu0 %v16_v20  ;;  %441 = vmatprep.mubr.f32.mxu1 %v24_v21 }
  0x27   :  { %430 = vmatmul.mubr.f32.gmra.mxu0 %v17_v22  ;;  %442 = vmatmul.mubr.f32.gmra.mxu1 %v25_v23 }
  0x28   :  { %432 = vmatprep.mubr.f32.mxu0 %v18_v24  ;;  %444 = vmatprep.mubr.f32.mxu1 %v26_v25 }
  0x2b   :  { %433 = vmatmul.mubr.f32.gmra.mxu0 %v19_v26  ;;  %445 = vmatmul.mubr.f32.gmra.mxu1 %v27_v27 }
  0x2c   :  { %435 = vmatprep.mubr.f32.mxu0 %v20_v28  ;;  %447 = vmatprep.mubr.f32.mxu1 %v28_v29 }
  0x2f   :  { %436 = vmatmul.mubr.f32.gmra.mxu0 %v21_v30  ;;  %448 = vmatmul.mubr.f32.gmra.mxu1 %v29_v31 }
  0xe3   :  { %v428_v32 = vpop.f32.mrf.mxu0  ;;  %v440_v34 = vpop.f32.mrf.mxu1 }
  0xe4   :  { %v125_v37 = vadd.f32 %v428_v32, %v282_v33  ;;  %v165_v38 = vadd.f32 %v440_v34, %v282_v33 }
  0xe5   :  { %v119_v35 = vpop.f32.mrf.mxu0  ;;  %v159_v36 = vpop.f32.mrf.mxu1 }
  0xe6   :  { %v120_v39 = vadd.f32 %v282_v33, %v119_v35  ;;  %v160_v40 = vadd.f32 %v282_v33, %v159_v36 }
  0xe7   :  { %v431_v41 = vpop.f32.mrf.mxu0  ;;  %v443_v42 = vpop.f32.mrf.mxu1 }
  0xe8   :  { %v318_v43 = vpack.c.bf16 %v125_v37, %v120_v39  ;;  %v338_v44 = vpack.c.bf16 %v165_v38, %v160_v40  ;;  %v135_v47 = vadd.f32 %v431_v41, %v282_v33  ;;  %v175_v48 = vadd.f32 %v443_v42, %v282_v33 }
  0xe9   :  { %v129_v45 = vpop.f32.mrf.mxu0  ;;  %v169_v46 = vpop.f32.mrf.mxu1 }
  0xea   :  { %319 = vst [vmem:[%s628_s3] sm:$0xff] %v318_v43   ;;  %358 = vst [vmem:[%s628_s3 + $0x20] sm:$0xff] %v338_v44   ;;  %v130_v49 = vadd.f32 %v282_v33, %v129_v45  ;;  %v170_v50 = vadd.f32 %v282_v33, %v169_v46 }
  0xeb   :  { %v434_v51 = vpop.f32.mrf.mxu0  ;;  %v446_v52 = vpop.f32.mrf.mxu1 }
  0xec   :  { %v323_v53 = vpack.c.bf16 %v135_v47, %v130_v49  ;;  %v343_v54 = vpack.c.bf16 %v175_v48, %v170_v50  ;;  %v145_v57 = vadd.f32 %v434_v51, %v282_v33  ;;  %v185_v58 = vadd.f32 %v446_v52, %v282_v33 }
  0xed   :  { %v139_v55 = vpop.f32.mrf.mxu0  ;;  %v179_v56 = vpop.f32.mrf.mxu1 }
  0xee   :  { %355 = vst [vmem:[%s628_s3 + $0x8] sm:$0xff] %v323_v53   ;;  %359 = vst [vmem:[%s628_s3 + $0x28] sm:$0xff] %v343_v54   ;;  %v140_v59 = vadd.f32 %v282_v33, %v139_v55  ;;  %v180_v60 = vadd.f32 %v282_v33, %v179_v56 }
  0xef   :  { %v437_v61 = vpop.f32.mrf.mxu0  ;;  %v449_v62 = vpop.f32.mrf.mxu1 }
  0xf0   :  { %v328_v63 = vpack.c.bf16 %v145_v57, %v140_v59  ;;  %v348_v0 = vpack.c.bf16 %v185_v58, %v180_v60  ;;  %v155_v3 = vadd.f32 %v437_v61, %v282_v33  ;;  %v195_v4 = vadd.f32 %v449_v62, %v282_v33 }
  0xf1   :  { %v149_v1 = vpop.f32.mrf.mxu0  ;;  %v189_v2 = vpop.f32.mrf.mxu1 }
  0xf2   :  { %356 = vst [vmem:[%s628_s3 + $0x10] sm:$0xff] %v328_v63   ;;  %360 = vst [vmem:[%s628_s3 + $0x30] sm:$0xff] %v348_v0   ;;  %v150_v5 = vadd.f32 %v282_v33, %v149_v1  ;;  %v190_v6 = vadd.f32 %v282_v33, %v189_v2 }
  0xf4   :  { %v333_v7 = vpack.c.bf16 %v155_v3, %v150_v5  ;;  %v353_v8 = vpack.c.bf16 %v195_v4, %v190_v6 }
  0xf6   :  { %357 = vst [vmem:[%s628_s3 + $0x18] sm:$0xff] %v333_v7   ;;  %361 = vst [vmem:[%s628_s3 + $0x38] sm:$0xff] %v353_v8  }

// kernel: hgnn_forward.5
= control target key start
LH: loop header
LB: loop body
LE: loop exit
PB: predicated region body
PF: predicated region fallthrough
CT: control target
= control target key end

     0   :  { %s574_s1 = inlined_call_operand.vmem [shape: bf16[128,128], index: 1, kind: input, shape index: {}]   ;;  %s575_s0 = inlined_call_operand.vmem [shape: bf16[128,128], index: 0, kind: input, shape index: {}]   ;;  %s576_s2 = inlined_call_operand.vmem [shape: f32[128,128], index: 2, kind: output, shape index: {}]  }
   0x1   :  { %v447_v0 = vld [vmem:[%s574_s1 + $0x38] sm:$0xff]   ;;  %v448_v1 = vld [vmem:[%s574_s1 + $0x30] sm:$0xff]   ;;  %v449_v2 = vld [vmem:[%s574_s1 + $0x28] sm:$0xff]  }
   0x2   :  { %399 = vmatprep.subr.bf16.mxu0 %v447_v0  ;;  %431 = vmatprep.subr.bf16.mxu1 %v447_v0  ;;  %v450_v3 = vld [vmem:[%s574_s1 + $0x20] sm:$0xff]   ;;  %v451_v6 = vld [vmem:[%s574_s1 + $0x18] sm:$0xff]   ;;  %v452_v7 = vld [vmem:[%s574_s1 + $0x10] sm:$0xff]  }
   0x3   :  { %400 = vmatpush3.bf16.msra.mxu0 %v447_v0  ;;  %439 = vmatpush3.bf16.msra.mxu1 %v447_v0  ;;  %v455_v4 = vld [vmem:[%s575_s0] sm:$0xff]   ;;  %v453_v8 = vld [vmem:[%s574_s1 + $0x8] sm:$0xff]   ;;  %v459_v12 = vld [vmem:[%s575_s0 + $0x10] sm:$0xff]  }
   0x4   :  { %401 = vmatprep.subr.bf16.mxu0 %v448_v1  ;;  %432 = vmatprep.subr.bf16.mxu1 %v448_v1  ;;  %v456_v5 = vld [vmem:[%s575_s0 + $0x20] sm:$0xff]   ;;  %v457_v10 = vld [vmem:[%s575_s0 + $0x8] sm:$0xff]   ;;  %v460_v13 = vld [vmem:[%s575_s0 + $0x30] sm:$0xff]  }
   0x5   :  { %415 = vmatprep.mubr.bf16.mxu0 %v455_v4  ;;  %423 = vmatprep.mubr.bf16.mxu1 %v456_v5  ;;  %v454_v9 = vld [vmem:[%s574_s1] sm:$0xff]   ;;  %v458_v11 = vld [vmem:[%s575_s0 + $0x28] sm:$0xff]   ;;  %v461_v14 = vld [vmem:[%s575_s0 + $0x18] sm:$0xff]  }
   0x6   :  { %v462_v15 = vld [vmem:[%s575_s0 + $0x38] sm:$0xff]  }
   0x7   :  { %402 = vmatpush3.bf16.msra.mxu0 %v448_v1  ;;  %440 = vmatpush3.bf16.msra.mxu1 %v448_v1 }
   0x8   :  { %403 = vmatprep.subr.bf16.mxu0 %v449_v2  ;;  %433 = vmatprep.subr.bf16.mxu1 %v449_v2 }
   0xb   :  { %404 = vmatpush3.bf16.msra.mxu0 %v449_v2  ;;  %441 = vmatpush3.bf16.msra.mxu1 %v449_v2 }
   0xc   :  { %405 = vmatprep.subr.bf16.mxu0 %v450_v3  ;;  %434 = vmatprep.subr.bf16.mxu1 %v450_v3 }
   0xf   :  { %406 = vmatpush3.bf16.msra.mxu0 %v450_v3  ;;  %442 = vmatpush3.bf16.msra.mxu1 %v450_v3 }
  0x10   :  { %407 = vmatprep.subr.bf16.mxu0 %v451_v6  ;;  %435 = vmatprep.subr.bf16.mxu1 %v451_v6 }
  0x13   :  { %408 = vmatpush3.bf16.msra.mxu0 %v451_v6  ;;  %443 = vmatpush3.bf16.msra.mxu1 %v451_v6 }
  0x14   :  { %409 = vmatprep.subr.bf16.mxu0 %v452_v7  ;;  %436 = vmatprep.subr.bf16.mxu1 %v452_v7 }
  0x17   :  { %410 = vmatpush3.bf16.msra.mxu0 %v452_v7  ;;  %444 = vmatpush3.bf16.msra.mxu1 %v452_v7 }
  0x18   :  { %411 = vmatprep.subr.bf16.mxu0 %v453_v8  ;;  %437 = vmatprep.subr.bf16.mxu1 %v453_v8 }
  0x1b   :  { %412 = vmatpush3.bf16.msra.mxu0 %v453_v8  ;;  %445 = vmatpush3.bf16.msra.mxu1 %v453_v8 }
  0x1c   :  { %413 = vmatprep.subr.bf16.mxu0 %v454_v9  ;;  %438 = vmatprep.subr.bf16.mxu1 %v454_v9 }
  0x1f   :  { %414 = vmatpush3.bf16.msra.mxu0 %v454_v9  ;;  %446 = vmatpush3.bf16.msra.mxu1 %v454_v9 }
  0x22   :  { %416 = vmatmul.mubr.bf16.vlgmr.msra.gmra.mxu0 %v457_v10  ;;  %424 = vmatmul.mubr.bf16.vlgmr.msra.gmra.mxu1 %v458_v11 }
  0x23   :  { %419 = vmatprep.mubr.bf16.mxu0 %v459_v12  ;;  %427 = vmatprep.mubr.bf16.mxu1 %v460_v13 }
  0x2a   :  { %420 = vmatmul.mubr.bf16.gmra.mxu0 %v461_v14  ;;  %428 = vmatmul.mubr.bf16.gmra.mxu1 %v462_v15 }
  0xe2   :  { %v417_v16 = vpop.f32.mrf.mxu0  ;;  %v425_v17 = vpop.f32.mrf.mxu1 }
  0xe3   :  { %v331_v18 = vmax.f32 %v417_v16, 0.0  ;;  %v339_v19 = vmax.f32 %v425_v17, 0.0 }
  0xe4   :  { %v215_v20 = vpop.f32.mrf.mxu0  ;;  %v247_v21 = vpop.f32.mrf.mxu1 }
  0xe5   :  { %347 = vst [vmem:[%s576_s2 + $0x10] sm:$0xff] %v331_v18  ;;  %355 = vst [vmem:[%s576_s2 + $0x50] sm:$0xff] %v339_v19  ;;  %v329_v22 = vmax.f32 %v215_v20, 0.0  ;;  %v337_v23 = vmax.f32 %v247_v21, 0.0 }
  0xe6   :  { %v418_v24 = vpop.f32.mrf.mxu0  ;;  %v426_v25 = vpop.f32.mrf.mxu1 }
  0xe7   :  { %345 = vst [vmem:[%s576_s2] sm:$0xff] %v329_v22  ;;  %353 = vst [vmem:[%s576_s2 + $0x40] sm:$0xff] %v337_v23  ;;  %v332_v26 = vmax.f32 %v418_v24, 0.0  ;;  %v340_v27 = vmax.f32 %v426_v25, 0.0 }
  0xe8   :  { %v218_v28 = vpop.f32.mrf.mxu0  ;;  %v250_v29 = vpop.f32.mrf.mxu1 }
  0xe9   :  { %348 = vst [vmem:[%s576_s2 + $0x18] sm:$0xff] %v332_v26  ;;  %356 = vst [vmem:[%s576_s2 + $0x58] sm:$0xff] %v340_v27  ;;  %v330_v30 = vmax.f32 %v218_v28, 0.0  ;;  %v338_v31 = vmax.f32 %v250_v29, 0.0 }
  0xea   :  { %v421_v32 = vpop.f32.mrf.mxu0  ;;  %v429_v33 = vpop.f32.mrf.mxu1 }
  0xeb   :  { %346 = vst [vmem:[%s576_s2 + $0x8] sm:$0xff] %v330_v30  ;;  %354 = vst [vmem:[%s576_s2 + $0x48] sm:$0xff] %v338_v31  ;;  %v335_v34 = vmax.f32 %v421_v32, 0.0  ;;  %v343_v35 = vmax.f32 %v429_v33, 0.0 }
  0xec   :  { %v231_v36 = vpop.f32.mrf.mxu0  ;;  %v263_v37 = vpop.f32.mrf.mxu1 }
  0xed   :  { %351 = vst [vmem:[%s576_s2 + $0x30] sm:$0xff] %v335_v34  ;;  %359 = vst [vmem:[%s576_s2 + $0x70] sm:$0xff] %v343_v35  ;;  %v333_v38 = vmax.f32 %v231_v36, 0.0  ;;  %v341_v39 = vmax.f32 %v263_v37, 0.0 }
  0xee   :  { %v422_v40 = vpop.f32.mrf.mxu0  ;;  %v430_v41 = vpop.f32.mrf.mxu1 }
  0xef   :  { %349 = vst [vmem:[%s576_s2 + $0x20] sm:$0xff] %v333_v38  ;;  %357 = vst [vmem:[%s576_s2 + $0x60] sm:$0xff] %v341_v39  ;;  %v336_v42 = vmax.f32 %v422_v40, 0.0  ;;  %v344_v43 = vmax.f32 %v430_v41, 0.0 }
  0xf0   :  { %v234_v44 = vpop.f32.mrf.mxu0  ;;  %v266_v45 = vpop.f32.mrf.mxu1 }
  0xf1   :  { %352 = vst [vmem:[%s576_s2 + $0x38] sm:$0xff] %v336_v42  ;;  %360 = vst [vmem:[%s576_s2 + $0x78] sm:$0xff] %v344_v43  ;;  %v334_v46 = vmax.f32 %v234_v44, 0.0  ;;  %v342_v47 = vmax.f32 %v266_v45, 0.0 }
  0xf3   :  { %350 = vst [vmem:[%s576_s2 + $0x28] sm:$0xff] %v334_v46  ;;  %358 = vst [vmem:[%s576_s2 + $0x68] sm:$0xff] %v342_v47 }

</bundles_post_ra>
